<compile_context>
chip_gen: v5e
topology: v5e:2x2
jax: 0.10.0
libtpu: 0.0.40
codegen_flags: <defaults>
</compile_context>

<pallas_src>
import functools

import jax
import jax.numpy as jnp
import numpy as np
from jax.experimental import pallas as pl
from jax.experimental.pallas import tpu as pltpu

# ----------------------------- config ---------------------------------------
S = 7
B = 2
C = 18
NUM_NODES_PER_CELL = C + B * 5  # 28
LAMBDA_COORD = 5.0
LAMBDA_NOOBJ = 0.5


def _cdiv(a, b):
    return -(-a // b)


def _round_up(x, m):
    return ((x + m - 1) // m) * m


# ----------------------------- kernel ---------------------------------------
def _iou_rows(a_xy, a_wh, b_xy, b_wh):
    """Midpoint-format IoU with (2, T) row layout for xy / wh."""
    a_min = a_xy - a_wh * 0.5
    a_max = a_xy + a_wh * 0.5
    b_min = b_xy - b_wh * 0.5
    b_max = b_xy + b_wh * 0.5

    lo = jnp.maximum(a_min, b_min)
    hi = jnp.minimum(a_max, b_max)
    ext = jnp.maximum(hi - lo, 0.0)          # (2, T)
    inter = ext[0:1, :] * ext[1:2, :]        # (1, T)

    da = a_max - a_min
    db = b_max - b_min
    area_a = jnp.abs(da[0:1, :] * da[1:2, :])
    area_b = jnp.abs(db[0:1, :] * db[1:2, :])

    # EUP reciprocal instead of VPU divide (exact variant to preserve numerics).
    return inter * pl.reciprocal(area_a + area_b - inter + 1e-6, approx=False)


def _yolo_loss_kernel(pred_ref, label_ref, out_ref, acc_ref, *, num_classes):
    """pred_ref / label_ref: (28, TILE_N) lane-dense tiles. acc_ref: (1, TILE_N)."""
    j = pl.program_id(1)
    nj = pl.num_programs(1)

    @pl.when(j == 0)
    def _init():
        acc_ref[...] = jnp.zeros_like(acc_ref)

    pred = pred_ref[...].astype(jnp.float32)    # (28, T)
    label = label_ref[...].astype(jnp.float32)  # (28, T)
    Cc = num_classes

    obj = label[Cc:Cc + 1, :]                   # (1, T)
    noobj = 1.0 - obj

    l_xy = label[Cc + 1:Cc + 3, :]              # (2, T)
    l_wh = label[Cc + 3:Cc + 5, :]              # (2, T)

    p1_pc = pred[Cc:Cc + 1, :]                  # (1, T)
    p1_xy = pred[Cc + 1:Cc + 3, :]              # (2, T)
    p1_wh = pred[Cc + 3:Cc + 5, :]              # (2, T)
    p2_pc = pred[Cc + 5:Cc + 6, :]              # (1, T)
    p2_xy = pred[Cc + 6:Cc + 8, :]              # (2, T)
    p2_wh = pred[Cc + 8:Cc + 10, :]             # (2, T)

    iou1 = _iou_rows(p1_xy, p1_wh, l_xy, l_wh)  # (1, T)
    iou2 = _iou_rows(p2_xy, p2_wh, l_xy, l_wh)  # (1, T)

    # torch.argmax picks the first index on ties -> box 1 wins ties.
    box1_best = iou1 >= iou2                    # (1, T)

    best_xy = jnp.where(box1_best, p1_xy, p2_xy)
    best_wh = jnp.where(box1_best, p1_wh, p2_wh)
    best_pc = jnp.where(box1_best, p1_pc, p2_pc)
    best_iou = jnp.where(box1_best, iou1, iou2)

    # Fused per-lane weighted squared error (one tile-level reduction only at end).
    cls_diff = obj * (pred[:Cc, :] - label[:Cc, :])                           # (C, T)
    xy_diff = obj * (best_xy - l_xy)                                          # (2, T)
    wh_diff = obj * (jnp.sqrt(jnp.maximum(best_wh, 0.0)) - jnp.sqrt(l_wh))    # (2, T)
    conf_diff = obj * (best_pc - best_iou)                                    # (1, T)
    no1 = noobj * p1_pc                                                       # (1, T)
    no2 = noobj * p2_pc                                                       # (1, T)

    per_lane = jnp.sum(cls_diff * cls_diff, axis=0, keepdims=True)
    per_lane = per_lane + LAMBDA_COORD * (
        jnp.sum(xy_diff * xy_diff, axis=0, keepdims=True)
        + jnp.sum(wh_diff * wh_diff, axis=0, keepdims=True)
    )
    per_lane = per_lane + conf_diff * conf_diff
    per_lane = per_lane + LAMBDA_NOOBJ * (no1 * no1 + no2 * no2)

    acc_ref[...] += per_lane

    @pl.when(j == nj - 1)
    def _finalize():
        total = jnp.sum(acc_ref[...])           # single cross-lane reduce per split
        out_ref[...] = jnp.broadcast_to(total, out_ref.shape).astype(out_ref.dtype)


# ----------------------------- wrapper ---------------------------------------
def yolo_loss(pred, label, *, num_splits=2, max_tile_n=8192):
    """pred, label: (batch, S, S, NUM_NODES_PER_CELL) float32 -> scalar loss."""
    b_s = pred.shape[0]
    D = pred.shape[-1]
    assert D == NUM_NODES_PER_CELL
    N = int(np.prod(pred.shape[:-1]))           # batch * S * S cells

    # Tile the cell (lane) axis: pick a tile <= max_tile_n that minimizes padding.
    per_split = _cdiv(N, num_splits)
    k = max(1, _cdiv(per_split, max_tile_n))
    tile = _round_up(_cdiv(per_split, k), 128)
    tiles_per_split = _cdiv(per_split, tile)
    n_pad = num_splits * tiles_per_split * tile

    pred2 = pred.reshape(N, D)
    label2 = label.reshape(N, D)
    if n_pad > N:
        pad = n_pad - N
        # Zero padding is loss-neutral: obj=0 kills coord/conf/class terms and
        # pred pc=0 kills the no-object term; IoU of zero boxes is 0.
        pred2 = jnp.pad(pred2, ((0, pad), (0, 0)))
        label2 = jnp.pad(label2, ((0, pad), (0, 0)))

    # Lane-dense layout: features on sublanes, cells on lanes.
    pred_t = pred2.T                            # (28, n_pad)
    label_t = label2.T                          # (28, n_pad)

    def in_map(i, j):
        return (0, i * tiles_per_split + j)

    out = pl.pallas_call(
        functools.partial(_yolo_loss_kernel, num_classes=C),
        out_shape=jax.ShapeDtypeStruct((num_splits * 8, 128), jnp.float32),
        grid_spec=pltpu.PrefetchScalarGridSpec(
            num_scalar_prefetch=0,
            grid=(num_splits, tiles_per_split),
            in_specs=[
                pl.BlockSpec((D, tile), in_map),
                pl.BlockSpec((D, tile), in_map),
            ],
            out_specs=pl.BlockSpec((8, 128), lambda i, j: (i, 0)),
            scratch_shapes=[pltpu.VMEM((1, tile), jnp.float32)],
        ),
        compiler_params=pltpu.CompilerParams(
            dimension_semantics=("parallel", "arbitrary"),
            vmem_limit_bytes=32 * 1024 * 1024,   # portable across v5e/v6e/v7x
        ),
    )(pred_t, label_t)

    # One partial sum per split (broadcast over its (8,128) block); combine + /batch
    partials = out.reshape(num_splits, 8, 128)[:, 0, 0]
    return jnp.sum(partials) / b_s


# ----------------------------- reference -------------------------------------
def yolo_loss_ref(pred, label):
    """Pure-JAX reference mirroring the PyTorch forward exactly."""
    b_s = pred.shape[0]
    pred_cls = pred[..., :C]
    label_cls = label[..., :C]
    p1_pc = pred[..., C:C + 1]
    p1 = pred[..., C + 1:C + 5]
    p2_pc = pred[..., C + 5:C + 6]
    p2 = pred[..., C + 6:C + 10]
    l_pc = label[..., C:C + 1]
    l_box = label[..., C + 1:C + 5]

    def iou(a, b):
        ax1, ay1 = a[..., 0:1] - a[..., 2:3] / 2, a[..., 1:2] - a[..., 3:4] / 2
        ax2, ay2 = a[..., 0:1] + a[..., 2:3] / 2, a[..., 1:2] + a[..., 3:4] / 2
        bx1, by1 = b[..., 0:1] - b[..., 2:3] / 2, b[..., 1:2] - b[..., 3:4] / 2
        bx2, by2 = b[..., 0:1] + b[..., 2:3] / 2, b[..., 1:2] + b[..., 3:4] / 2
        inter = jnp.clip(jnp.minimum(ax2, bx2) - jnp.maximum(ax1, bx1), 0) * \
                jnp.clip(jnp.minimum(ay2, by2) - jnp.maximum(ay1, by1), 0)
        area = jnp.abs((ax2 - ax1) * (ay2 - ay1)) + jnp.abs((bx2 - bx1) * (by2 - by1))
        return inter / (area - inter + 1e-6)

    i1, i2 = iou(p1, l_box), iou(p2, l_box)
    best1 = i1 >= i2
    best_box = jnp.where(best1, p1, p2)
    best_pc = jnp.where(best1, p1_pc, p2_pc)
    best_iou = jnp.where(best1, i1, i2)
    obj, noobj = l_pc, 1.0 - l_pc
    sse = lambda a, b: jnp.sum((a - b) ** 2)
    coord = sse(obj * best_box[..., :2], obj * l_box[..., :2])
    coord += sse(obj * jnp.sqrt(jnp.clip(best_box[..., 2:4], 0)),
                 obj * jnp.sqrt(l_box[..., 2:4]))
    conf = sse(obj * best_pc, obj * best_iou)
    nloss = sse(noobj * p1_pc, 0.0) + sse(noobj * p2_pc, 0.0)
    closs = sse(obj * pred_cls, obj * label_cls)
    return (LAMBDA_COORD * coord + conf + LAMBDA_NOOBJ * nloss + closs) / b_s


# ----------------------------- main -------------------------------------------
if __name__ == "__main__":
    key = jax.random.PRNGKey(0)
    k_pred, k_label, k_obj = jax.random.split(key, 3)

    batch = 2
    # pred: network output, arbitrary values in [0, 1)
    pred = jax.random.uniform(
        k_pred, (batch, S, S, NUM_NODES_PER_CELL), dtype=jnp.float32
    )
    # label: boxes/classes in [0, 1), objectness (index C) in {0, 1}
    label = jax.random.uniform(
        k_label, (batch, S, S, NUM_NODES_PER_CELL), dtype=jnp.float32
    )
    obj = (jax.random.uniform(k_obj, (batch, S, S)) > 0.5).astype(jnp.float32)
    label = label.at[..., C].set(obj)

    loss = jax.block_until_ready(yolo_loss(pred, label))
    ref = jax.block_until_ready(yolo_loss_ref(pred, label))
    np.testing.assert_allclose(np.asarray(loss), np.asarray(ref), rtol=1e-5, atol=1e-5)

    # TODO(synk): the PyTorch forward also print()s the four loss components; the
    # kernel only returns the combined scalar loss (debug printing omitted).
    print("KERNEL_OK")
</pallas_src>

<mosaic_0001>
module attributes {stable_mosaic.version = 11 : i64} {
  func.func @_yolo_loss_kernel(%arg0: i32, %arg1: i32, %arg2: memref<28x128xf32, #tpu.memory_space<vmem>>, %arg3: memref<28x128xf32, #tpu.memory_space<vmem>>, %arg4: memref<8x128xf32, #tpu.memory_space<vmem>>, %arg5: memref<1x128xf32, #tpu.memory_space<vmem>>) attributes {dimension_semantics = [#tpu.dimension_semantics<parallel>, #tpu.dimension_semantics<arbitrary>], iteration_bounds = array<i64: 2, 1>, scalar_prefetch = 0 : i64, scratch_operands = 1 : i64, tpu.core_type = #tpu.core_type<tc>, window_params = [{transform_indices = @transform_0, window_bounds = array<i64: 28, 128>}, {transform_indices = @transform_1, window_bounds = array<i64: 28, 128>}, {transform_indices = @transform_2, window_bounds = array<i64: 8, 128>}]} {
    %c0_i32 = arith.constant 0 : i32
    %0 = arith.cmpi eq, %arg1, %c0_i32 : i32
    %1 = arith.extui %0 : i1 to i32
    %c0_i32_0 = arith.constant 0 : i32
    %2 = arith.cmpi ne, %1, %c0_i32_0 : i32
    scf.if %2 {
      %cst_28 = arith.constant 0.000000e+00 : f32
      %143 = vector.broadcast %cst_28 : f32 to vector<1x128xf32>
      %c0_29 = arith.constant 0 : index
      %c0_30 = arith.constant 0 : index
      %144 = vector.load %arg5[%c0_29, %c0_30] : memref<1x128xf32, #tpu.memory_space<vmem>>, vector<1x128xf32>
      tpu.vector_store %arg5[%c0_29, %c0_30], %143 {strides = array<i32>} : memref<1x128xf32, #tpu.memory_space<vmem>>, vector<1x128xf32>,
    } else {
    }
    %c0 = arith.constant 0 : index
    %c0_1 = arith.constant 0 : index
    %3 = vector.load %arg2[%c0, %c0_1] : memref<28x128xf32, #tpu.memory_space<vmem>>, vector<28x128xf32>
    %c0_2 = arith.constant 0 : index
    %c0_3 = arith.constant 0 : index
    %4 = vector.load %arg3[%c0_2, %c0_3] : memref<28x128xf32, #tpu.memory_space<vmem>>, vector<28x128xf32>
    %5 = vector.extract_strided_slice %4 {offsets = [18, 0], sizes = [1, 128], strides = [1, 1]} : vector<28x128xf32> to vector<1x128xf32>
    %cst = arith.constant 1.000000e+00 : f32
    %6 = vector.broadcast %cst : f32 to vector<1x128xf32>
    %7 = arith.subf %6, %5 : vector<1x128xf32>
    %8 = vector.extract_strided_slice %4 {offsets = [19, 0], sizes = [2, 128], strides = [1, 1]} : vector<28x128xf32> to vector<2x128xf32>
    %9 = vector.extract_strided_slice %4 {offsets = [21, 0], sizes = [2, 128], strides = [1, 1]} : vector<28x128xf32> to vector<2x128xf32>
    %10 = vector.extract_strided_slice %3 {offsets = [18, 0], sizes = [1, 128], strides = [1, 1]} : vector<28x128xf32> to vector<1x128xf32>
    %11 = vector.extract_strided_slice %3 {offsets = [19, 0], sizes = [2, 128], strides = [1, 1]} : vector<28x128xf32> to vector<2x128xf32>
    %12 = vector.extract_strided_slice %3 {offsets = [21, 0], sizes = [2, 128], strides = [1, 1]} : vector<28x128xf32> to vector<2x128xf32>
    %13 = vector.extract_strided_slice %3 {offsets = [23, 0], sizes = [1, 128], strides = [1, 1]} : vector<28x128xf32> to vector<1x128xf32>
    %14 = vector.extract_strided_slice %3 {offsets = [24, 0], sizes = [2, 128], strides = [1, 1]} : vector<28x128xf32> to vector<2x128xf32>
    %15 = vector.extract_strided_slice %3 {offsets = [26, 0], sizes = [2, 128], strides = [1, 1]} : vector<28x128xf32> to vector<2x128xf32>
    %cst_4 = arith.constant 5.000000e-01 : f32
    %16 = vector.broadcast %cst_4 : f32 to vector<2x128xf32>
    %17 = arith.mulf %12, %16 : vector<2x128xf32>
    %18 = arith.subf %11, %17 : vector<2x128xf32>
    %cst_5 = arith.constant 5.000000e-01 : f32
    %19 = vector.broadcast %cst_5 : f32 to vector<2x128xf32>
    %20 = arith.mulf %12, %19 : vector<2x128xf32>
    %21 = arith.addf %11, %20 : vector<2x128xf32>
    %cst_6 = arith.constant 5.000000e-01 : f32
    %22 = vector.broadcast %cst_6 : f32 to vector<2x128xf32>
    %23 = arith.mulf %9, %22 : vector<2x128xf32>
    %24 = arith.subf %8, %23 : vector<2x128xf32>
    %cst_7 = arith.constant 5.000000e-01 : f32
    %25 = vector.broadcast %cst_7 : f32 to vector<2x128xf32>
    %26 = arith.mulf %9, %25 : vector<2x128xf32>
    %27 = arith.addf %8, %26 : vector<2x128xf32>
    %28 = arith.maximumf %18, %24 : vector<2x128xf32>
    %29 = arith.minimumf %21, %27 : vector<2x128xf32>
    %30 = arith.subf %29, %28 : vector<2x128xf32>
    %cst_8 = arith.constant 0.000000e+00 : f32
    %31 = vector.broadcast %cst_8 : f32 to vector<2x128xf32>
    %32 = arith.maximumf %30, %31 : vector<2x128xf32>
    %33 = vector.extract_strided_slice %32 {offsets = [0, 0], sizes = [1, 128], strides = [1, 1]} : vector<2x128xf32> to vector<1x128xf32>
    %34 = vector.extract_strided_slice %32 {offsets = [1, 0], sizes = [1, 128], strides = [1, 1]} : vector<2x128xf32> to vector<1x128xf32>
    %35 = arith.mulf %33, %34 : vector<1x128xf32>
    %36 = arith.subf %21, %18 : vector<2x128xf32>
    %37 = arith.subf %27, %24 : vector<2x128xf32>
    %38 = vector.extract_strided_slice %36 {offsets = [0, 0], sizes = [1, 128], strides = [1, 1]} : vector<2x128xf32> to vector<1x128xf32>
    %39 = vector.extract_strided_slice %36 {offsets = [1, 0], sizes = [1, 128], strides = [1, 1]} : vector<2x128xf32> to vector<1x128xf32>
    %40 = arith.mulf %38, %39 : vector<1x128xf32>
    %41 = math.absf %40 : vector<1x128xf32>
    %42 = vector.extract_strided_slice %37 {offsets = [0, 0], sizes = [1, 128], strides = [1, 1]} : vector<2x128xf32> to vector<1x128xf32>
    %43 = vector.extract_strided_slice %37 {offsets = [1, 0], sizes = [1, 128], strides = [1, 1]} : vector<2x128xf32> to vector<1x128xf32>
    %44 = arith.mulf %42, %43 : vector<1x128xf32>
    %45 = math.absf %44 : vector<1x128xf32>
    %46 = arith.addf %41, %45 : vector<1x128xf32>
    %47 = arith.subf %46, %35 : vector<1x128xf32>
    %cst_9 = arith.constant 9.99999997E-7 : f32
    %48 = vector.broadcast %cst_9 : f32 to vector<1x128xf32>
    %49 = arith.addf %47, %48 : vector<1x128xf32>
    %50 = tpu.reciprocal %49 : vector<1x128xf32> -> vector<1x128xf32>
    %51 = arith.mulf %35, %50 : vector<1x128xf32>
    %cst_10 = arith.constant 5.000000e-01 : f32
    %52 = vector.broadcast %cst_10 : f32 to vector<2x128xf32>
    %53 = arith.mulf %15, %52 : vector<2x128xf32>
    %54 = arith.subf %14, %53 : vector<2x128xf32>
    %cst_11 = arith.constant 5.000000e-01 : f32
    %55 = vector.broadcast %cst_11 : f32 to vector<2x128xf32>
    %56 = arith.mulf %15, %55 : vector<2x128xf32>
    %57 = arith.addf %14, %56 : vector<2x128xf32>
    %cst_12 = arith.constant 5.000000e-01 : f32
    %58 = vector.broadcast %cst_12 : f32 to vector<2x128xf32>
    %59 = arith.mulf %9, %58 : vector<2x128xf32>
    %60 = arith.subf %8, %59 : vector<2x128xf32>
    %cst_13 = arith.constant 5.000000e-01 : f32
    %61 = vector.broadcast %cst_13 : f32 to vector<2x128xf32>
    %62 = arith.mulf %9, %61 : vector<2x128xf32>
    %63 = arith.addf %8, %62 : vector<2x128xf32>
    %64 = arith.maximumf %54, %60 : vector<2x128xf32>
    %65 = arith.minimumf %57, %63 : vector<2x128xf32>
    %66 = arith.subf %65, %64 : vector<2x128xf32>
    %cst_14 = arith.constant 0.000000e+00 : f32
    %67 = vector.broadcast %cst_14 : f32 to vector<2x128xf32>
    %68 = arith.maximumf %66, %67 : vector<2x128xf32>
    %69 = vector.extract_strided_slice %68 {offsets = [0, 0], sizes = [1, 128], strides = [1, 1]} : vector<2x128xf32> to vector<1x128xf32>
    %70 = vector.extract_strided_slice %68 {offsets = [1, 0], sizes = [1, 128], strides = [1, 1]} : vector<2x128xf32> to vector<1x128xf32>
    %71 = arith.mulf %69, %70 : vector<1x128xf32>
    %72 = arith.subf %57, %54 : vector<2x128xf32>
    %73 = arith.subf %63, %60 : vector<2x128xf32>
    %74 = vector.extract_strided_slice %72 {offsets = [0, 0], sizes = [1, 128], strides = [1, 1]} : vector<2x128xf32> to vector<1x128xf32>
    %75 = vector.extract_strided_slice %72 {offsets = [1, 0], sizes = [1, 128], strides = [1, 1]} : vector<2x128xf32> to vector<1x128xf32>
    %76 = arith.mulf %74, %75 : vector<1x128xf32>
    %77 = math.absf %76 : vector<1x128xf32>
    %78 = vector.extract_strided_slice %73 {offsets = [0, 0], sizes = [1, 128], strides = [1, 1]} : vector<2x128xf32> to vector<1x128xf32>
    %79 = vector.extract_strided_slice %73 {offsets = [1, 0], sizes = [1, 128], strides = [1, 1]} : vector<2x128xf32> to vector<1x128xf32>
    %80 = arith.mulf %78, %79 : vector<1x128xf32>
    %81 = math.absf %80 : vector<1x128xf32>
    %82 = arith.addf %77, %81 : vector<1x128xf32>
    %83 = arith.subf %82, %71 : vector<1x128xf32>
    %cst_15 = arith.constant 9.99999997E-7 : f32
    %84 = vector.broadcast %cst_15 : f32 to vector<1x128xf32>
    %85 = arith.addf %83, %84 : vector<1x128xf32>
    %86 = tpu.reciprocal %85 : vector<1x128xf32> -> vector<1x128xf32>
    %87 = arith.mulf %71, %86 : vector<1x128xf32>
    %88 = arith.cmpf oge, %51, %87 : vector<1x128xf32>
    %89 = vector.shape_cast %88 : vector<1x128xi1> to vector<1x128xi1>
    %90 = vector.broadcast %89 : vector<1x128xi1> to vector<2x128xi1>
    %91 = arith.select %90, %11, %14 : vector<2x128xi1>, vector<2x128xf32>
    %92 = vector.shape_cast %88 : vector<1x128xi1> to vector<1x128xi1>
    %93 = vector.broadcast %92 : vector<1x128xi1> to vector<2x128xi1>
    %94 = arith.select %93, %12, %15 : vector<2x128xi1>, vector<2x128xf32>
    %95 = arith.select %88, %10, %13 : vector<1x128xi1>, vector<1x128xf32>
    %96 = arith.select %88, %51, %87 : vector<1x128xi1>, vector<1x128xf32>
    %97 = vector.extract_strided_slice %3 {offsets = [0, 0], sizes = [18, 128], strides = [1, 1]} : vector<28x128xf32> to vector<18x128xf32>
    %98 = vector.extract_strided_slice %4 {offsets = [0, 0], sizes = [18, 128], strides = [1, 1]} : vector<28x128xf32> to vector<18x128xf32>
    %99 = arith.subf %97, %98 : vector<18x128xf32>
    %100 = vector.broadcast %5 : vector<1x128xf32> to vector<18x128xf32>
    %101 = arith.mulf %100, %99 : vector<18x128xf32>
    %102 = arith.subf %91, %8 : vector<2x128xf32>
    %103 = vector.broadcast %5 : vector<1x128xf32> to vector<2x128xf32>
    %104 = arith.mulf %103, %102 : vector<2x128xf32>
    %cst_16 = arith.constant 0.000000e+00 : f32
    %105 = vector.broadcast %cst_16 : f32 to vector<2x128xf32>
    %106 = arith.maximumf %94, %105 : vector<2x128xf32>
    %107 = math.sqrt %106 : vector<2x128xf32>
    %108 = math.sqrt %9 : vector<2x128xf32>
    %109 = arith.subf %107, %108 : vector<2x128xf32>
    %110 = vector.broadcast %5 : vector<1x128xf32> to vector<2x128xf32>
    %111 = arith.mulf %110, %109 : vector<2x128xf32>
    %112 = arith.subf %95, %96 : vector<1x128xf32>
    %113 = arith.mulf %5, %112 : vector<1x128xf32>
    %114 = arith.mulf %7, %10 : vector<1x128xf32>
    %115 = arith.mulf %7, %13 : vector<1x128xf32>
    %116 = arith.mulf %101, %101 : vector<18x128xf32>
    %cst_17 = arith.constant dense<0.000000e+00> : vector<128xf32>
    %117 = vector.multi_reduction <add>, %116, %cst_17 [0] : vector<18x128xf32> to vector<128xf32>
    %118 = vector.shape_cast %117 : vector<128xf32> to vector<1x128xf32>
    %119 = arith.mulf %104, %104 : vector<2x128xf32>
    %cst_18 = arith.constant dense<0.000000e+00> : vector<128xf32>
    %120 = vector.multi_reduction <add>, %119, %cst_18 [0] : vector<2x128xf32> to vector<128xf32>
    %121 = vector.shape_cast %120 : vector<128xf32> to vector<1x128xf32>
    %122 = arith.mulf %111, %111 : vector<2x128xf32>
    %cst_19 = arith.constant dense<0.000000e+00> : vector<128xf32>
    %123 = vector.multi_reduction <add>, %122, %cst_19 [0] : vector<2x128xf32> to vector<128xf32>
    %124 = vector.shape_cast %123 : vector<128xf32> to vector<1x128xf32>
    %125 = arith.addf %121, %124 : vector<1x128xf32>
    %cst_20 = arith.constant 5.000000e+00 : f32
    %126 = vector.broadcast %cst_20 : f32 to vector<1x128xf32>
    %127 = arith.mulf %126, %125 : vector<1x128xf32>
    %128 = arith.addf %118, %127 : vector<1x128xf32>
    %129 = arith.mulf %113, %113 : vector<1x128xf32>
    %130 = arith.addf %128, %129 : vector<1x128xf32>
    %131 = arith.mulf %114, %114 : vector<1x128xf32>
    %132 = arith.mulf %115, %115 : vector<1x128xf32>
    %133 = arith.addf %131, %132 : vector<1x128xf32>
    %cst_21 = arith.constant 5.000000e-01 : f32
    %134 = vector.broadcast %cst_21 : f32 to vector<1x128xf32>
    %135 = arith.mulf %134, %133 : vector<1x128xf32>
    %136 = arith.addf %130, %135 : vector<1x128xf32>
    %c0_22 = arith.constant 0 : index
    %c0_23 = arith.constant 0 : index
    %137 = vector.load %arg5[%c0_22, %c0_23] : memref<1x128xf32, #tpu.memory_space<vmem>>, vector<1x128xf32>
    %138 = arith.addf %137, %136 : vector<1x128xf32>
    %c0_24 = arith.constant 0 : index
    %c0_25 = arith.constant 0 : index
    %139 = vector.load %arg5[%c0_24, %c0_25] : memref<1x128xf32, #tpu.memory_space<vmem>>, vector<1x128xf32>
    tpu.vector_store %arg5[%c0_24, %c0_25], %138 {strides = array<i32>} : memref<1x128xf32, #tpu.memory_space<vmem>>, vector<1x128xf32>,
    %c0_i32_26 = arith.constant 0 : i32
    %140 = arith.cmpi eq, %arg1, %c0_i32_26 : i32
    %141 = arith.extui %140 : i1 to i32
    %c0_i32_27 = arith.constant 0 : i32
    %142 = arith.cmpi ne, %141, %c0_i32_27 : i32
    scf.if %142 {
      %c0_28 = arith.constant 0 : index
      %c0_29 = arith.constant 0 : index
      %143 = vector.load %arg5[%c0_28, %c0_29] : memref<1x128xf32, #tpu.memory_space<vmem>>, vector<1x128xf32>
      %144 = vector.shape_cast %143 : vector<1x128xf32> to vector<1x1x128xf32>
      %cst_30 = arith.constant dense<0.000000e+00> : vector<1xf32>
      %145 = vector.multi_reduction <add>, %144, %cst_30 [1, 2] : vector<1x1x128xf32> to vector<1xf32>
      %146 = vector.shape_cast %145 : vector<1xf32> to vector<1x1x1xf32>
      %147 = vector.extract %146[0, 0, 0] : f32 from vector<1x1x1xf32>
      %148 = vector.broadcast %147 : f32 to vector<8x128xf32>
      %c0_31 = arith.constant 0 : index
      %c0_32 = arith.constant 0 : index
      %149 = vector.load %arg4[%c0_31, %c0_32] : memref<8x128xf32, #tpu.memory_space<vmem>>, vector<8x128xf32>
      tpu.vector_store %arg4[%c0_31, %c0_32], %148 {strides = array<i32>} : memref<8x128xf32, #tpu.memory_space<vmem>>, vector<8x128xf32>,
    } else {
    }
    return
  }
  func.func @transform_0(%arg0: i32, %arg1: i32) -> (i32, i32) {
    %c1_i32 = arith.constant 1 : i32
    %0 = arith.muli %arg0, %c1_i32 : i32
    %1 = arith.addi %0, %arg1 : i32
    %c0_i32 = arith.constant 0 : i32
    %c0_i32_0 = arith.constant 0 : i32
    return %c0_i32, %1 : i32, i32
  }
  func.func @transform_1(%arg0: i32, %arg1: i32) -> (i32, i32) {
    %c1_i32 = arith.constant 1 : i32
    %0 = arith.muli %arg0, %c1_i32 : i32
    %1 = arith.addi %0, %arg1 : i32
    %c0_i32 = arith.constant 0 : i32
    %c0_i32_0 = arith.constant 0 : i32
    return %c0_i32, %1 : i32, i32
  }
  func.func @transform_2(%arg0: i32, %arg1: i32) -> (i32, i32) {
    %c0_i32 = arith.constant 0 : i32
    %c0_i32_0 = arith.constant 0 : i32
    return %arg0, %c0_i32 : i32, i32
  }
}

</mosaic_0001>

<bundles_post_ra>
// kernel: tpu_custom_call.1
= control target key start
LH: loop header
LB: loop body
LE: loop exit
PB: predicated region body
PF: predicated region fallthrough
CT: control target
= control target key end

     0   :  { %s1055_s0 = inlined_call_operand.hbm [shape: f32[28,256], index: 0, kind: input, shape index: {}]   ;;  %s1056_s1 = inlined_call_operand.hbm [shape: f32[28,256], index: 1, kind: input, shape index: {}]   ;;  %s1057_s2 = inlined_call_operand.hbm [shape: f32[16,128], index: 2, kind: output, shape index: {}]  }
   0x1   :  { %1058 = sst [smem:[#allocation12_spill]] %s1055_s0 }
   0x2   :  { %7 = vsyncpa [#allocation4], 0 }
   0x3   :  { %9 = vsyncpa [#allocation4 + $0x1], 0 }
   0x4   :  { %10 = vsyncpa [#allocation7], 0 }
   0x5   :  { %12 = vsyncpa [#allocation7 + $0x1], 0 }
   0x6   :  { %13 = vsyncpa [#allocation5], 0 }
   0x7   :  { %15 = vsyncpa [#allocation5 + $0x1], 0  ;;  %s852_s9 = smov 0   ;;  %s854_s10 = smov 0  }
   0x8   :  { %s856_s11 = smov 0   ;;  %s858_s12 = smov 0  }
   0x9   :  { %s860_s13 = smov 0   ;;  %s862_s14 = smov 0  }
   0xa LB: > { %s586_s15 = sadd.s32 4294967295, %s830_s14   ;;  %s587_s16 = sadd.s32 4294967294, %s830_s14   ;;  %s830_s14 = sphi %s862_s14, %s21_s14   ;;  %s826_s13 = sphi %s860_s13, %s1071_s13   ;;  %s822_s12 = sphi %s858_s12, %s1070_s12   ;;  %s818_s11 = sphi %s856_s11, %s1069_s11   ;;  %s814_s10 = sphi %s854_s10, %s1068_s10   ;;  %s810_s9 = sphi %s852_s9, %s1067_s9  }
   0xb   : > { %s33_s17 = sadd.s32 1, %s826_s13  ;;  %s42_s18 = sadd.s32 1, %s818_s11 }
   0xc   : > { %p35_p0 = scmp.ge.s32.totalorder %s33_s17, 2  ;;  %p49_p1 = scmp.ne.s32.totalorder %s818_s11, %s814_s10 }
   0xd   : > { %p50_p2 = scmp.eq.s32.totalorder %s830_s14, 0  ;;  %p55_p3 = scmp.ne.s32.totalorder %s814_s10, %s810_s9 }
   0xe   : > { %s1073_s17 = smov (%p35_p0, %s33_s17), 0  ;;  %p56_p5 = scmp.eq.s32.totalorder %s586_s15, 0 }
   0xf   : > { %p893_p4 = por %p50_p2, %p49_p1  ;;  %s39_s20 = ssub.s32 %s826_s13, %s1073_s17 }
  0x10   : > { %p107_p6 = scmp.eq.s32.totalorder %s586_s15, 1  ;;  %p40_p7 = scmp.eq.s32.totalorder %s39_s20, 0 }
  0x11   : > { %p899_p8 = por %p56_p5, %p55_p3  ;;  %p113_p10 = scmp.eq.s32.totalorder %s587_s16, 1 }
  0x12   : > { %p903_p9 = por %p107_p6, %p49_p1  ;;  %p589_p12 = scmp.ge.s32.totalorder %s830_s14, 2 }
  0x13   : > { %s908_s23 = scalar_select %p40_p7, %s818_s11, %s42_s18  }
  0x14   : > { %p910_p11 = por %p113_p10, %p55_p3  ;;  %p621_p13 = scmp.lt.s32.totalorder %s830_s14, 2 }
  0x15   : > { %s917_s25 = sand.u32 1, %s818_s11   ;;  %s591_s27 = sshll.u32 %s826_s13, 3 }
  0x16   : > { %s590_s26 = sshll.u32 %s917_s25, 5  ;;  %s1063_s0 = sld [smem:[#allocation12_spill]] }
  0x17   : > { %s137_s3 = scalar_lea.vmem [#allocation3], %s590_s26  ;;  %p926_p0 = pnand %p621_p13, %p893_p4 }
  0x18   : > { %s145_s4 = sshll.u32 %s137_s3, 4  ;;  %s134_s7 = scalar_lea.sflag [#allocation4], %s917_s25  ;;  %s146_s4 = int_to_ptr.vmem [resolvable:$true] %s145_s4 }
  0x19   : > { %s832_s8 = smov 256   ;;  %s833_s15 = smov 128  }
  0x1a   : > { %s834_s16 = smov 8   ;;  %p594_p1 = scmp.ge.s32.totalorder %s830_s14, 1 }
  0x1b   : > { %p175_p2 = scmp.lt.s32.totalorder %s830_s14, 3  ;;  %s164_s19 = scalar_lea.hbm %s1056_s1, %s591_s27 }
  0x1c   : > { %s142_s30 = scalar_lea.hbm %s1063_s0, %s591_s27  ;;  %s165_s28 = sshll.u32 %s164_s19, 4  ;;  %s166_s28 = int_to_ptr.hbm [resolvable:$true] %s165_s28 }
  0x1d   : > { %s143_s5 = sshll.u32 %s142_s30, 4  ;;  %p176_p3 = pnand %p594_p1, %p175_p2  ;;  %s144_s5 = int_to_ptr.hbm [resolvable:$true] %s143_s5 }
  0x1e   : > { %613 = dma.hbm_to_vmem [thread:$0]  (!%p926_p0), %s144_s5, 512, %s146_s4, %s134_s7, %s832_s8, %s833_s15, %s834_s16  }
  0x1f   : > { %s159_s29 = scalar_lea.vmem [#allocation6], %s590_s26  ;;  %s156_s3 = scalar_lea.sflag [#allocation7], %s917_s25 }
  0x20   : > { %s167_s30 = sshll.u32 %s159_s29, 4  ;;  %179 = sbr.rel (%p176_p3) target bundleno = 347 (0x15b), region = 28  ;;  %s168_s30 = int_to_ptr.vmem [resolvable:$true] %s167_s30 }
  0x21   : > { %616 = dma.hbm_to_vmem [thread:$0]  (!%p926_p0), %s166_s28, 512, %s168_s30, %s156_s3, %s832_s8, %s833_s15, %s834_s16  }
  0x22   : > { %s942_s0 = sand.u32 (!%p176_p3), 1, %s814_s10  }
  0x23   : > { %s595_s4 = sshll.u32 (!%p176_p3), %s942_s0, 5  ;;  %s182_s5 = scalar_lea.sflag (!%p176_p3), [#allocation4], %s942_s0 }
  0x24   : > { %s946_s7 = scalar_lea.vmem (!%p176_p3), [#allocation3], %s595_s4 }
  0x25   : > { %797 = dma.done.wait (%p899_p8), %s182_s5, 512  }
  0x26   : > { %799 = vsyncadd (%p899_p8), %s182_s5, 4294966784  ;;  %s192_s25 = scalar_lea.sflag [#allocation7], %s942_s0  ;;  %s953_s26 = scalar_lea.vmem [#allocation6], %s595_s4 }
  0x27   : > { %801 = dma.done.wait (%p899_p8), %s192_s25, 512  }
  0x28   : > { %803 = vsyncadd (%p899_p8), %s192_s25, 4294966784  ;;  %v960_v0 = vld [vmem:[%s946_s7 + $0x10] sm:$0xff]  ;;  %v963_v1 = vld [vmem:[%s946_s7 + $0x18] sm:$0xf]  ;;  %vm401_vm9 = vcmask 1041408   ;;  %vm454_vm15 = vcmask 1040384  }
  0x29   : > { %v237_v2 = vmul.f32 0.5, %v960_v0  ;;  %v967_v3 = vld [vmem:[%s953_s26 + $0x10] sm:$0xff]  ;;  %v287_v4 = vmul.f32 0.5, %v963_v1  ;;  %v229_v58 = vld [vmem:[%s946_s7] sm:$0xff]  ;;  %v230_v59 = vld [vmem:[%s946_s7 + $0x8] sm:$0xff]  ;;  %s597_s21 = sshll.u32 %s942_s0, 3 }
  0x2a   : > { %v243_v6 = vmul.f32 0.5, %v967_v3  ;;  %v354_v46 = vsub.f32 %v960_v0, %v967_v3  ;;  %v980_v48 = vperm.slane %v967_v3, 2  ;;  %v233_v62 = vld [vmem:[%s953_s26] sm:$0xff]  ;;  %v234_v63 = vld [vmem:[%s953_s26 + $0x8] sm:$0xff]  ;;  %vm381_vm11 = vcmp.eq.f32.partialorder %v967_v3, inf  ;;  %s599_s27 = sshll.u32 %s822_s12, 3 }
  0x2b   : > { %v239_v5 = vrot.slane %v237_v2, 2  ;;  %v289_v7 = vrot.slane %v287_v4, 2  ;;  %vm383_vm12 = vcmp.eq.f32.partialorder %v967_v3, 0.0  ;;  %s478_s15 = scalar_lea.hbm %s1057_s2, %s599_s27  ;;  %s221_s16 = scalar_lea.vmem [#allocation8], %s597_s21 }
  0x2c   : > { %v245_v10 = vrot.slane %v243_v6, 2  ;;  %v358_v50 = vmul.f32 %v980_v48, %v354_v46  ;;  %s480_s18 = sshll.u32 %s221_s16, 4  ;;  %s482_s20 = sshll.u32 %s478_s15, 4  ;;  %s481_s18 = int_to_ptr.vmem [resolvable:$true] %s480_s18  ;;  %s483_s20 = int_to_ptr.hbm [resolvable:$true] %s482_s20 }
  0x2d   : > { %v241_v8 = vsub.f32 %v960_v0, %v239_v5  ;;  %v242_v9 = vadd.f32 %v239_v5, %v960_v0  ;;  %v291_v11 = vsub.f32 %v963_v1, %v289_v7  ;;  %v292_v12 = vadd.f32 %v289_v7, %v963_v1  ;;  %s468_s28 = scalar_lea.sflag [#allocation5], %s942_s0  ;;  %s758_s29 = sshra.s32 %s483_s20, 4  ;;  %s759_s29 = int_to_ptr.hbm [resolvable:$true] %s758_s29 }
  0x2e   : > { %v247_v13 = vsub.f32 %v967_v3, %v245_v10  ;;  %v248_v14 = vadd.f32 %v245_v10, %v967_v3  ;;  %s760_s30 = scalar_lea.hbm %s759_s29, 8  ;;  %s764_s4 = scalar_lea.hbm %s1057_s2, 16 }
  0x2f   : > { %v257_v15 = vsub.f32 %v242_v9, %v241_v8  ;;  %v307_v16 = vsub.f32 %v292_v12, %v291_v11  ;;  %p761_p4 = scmp.ne.s32.totalorder %s759_s29, %s760_s30  ;;  %p765_p7 = scmp.lt.s32.totalorder %s759_s29, %s1057_s2 }
  0x30   : > { %v249_v17 = vmax.f32 %v241_v8, %v247_v13  ;;  %v250_v18 = vmin.f32 %v242_v9, %v248_v14  ;;  %v258_v19 = vsub.f32 %v248_v14, %v247_v13  ;;  %v294_v21 = vrot.slane %v247_v13, 3  ;;  %p766_p8 = scmp.lt.s32.totalorder %s764_s4, %s760_s30 }
  0x31   : > { %v260_v20 = vrot.slane %v257_v15, 1  ;;  %v298_v22 = vrot.slane %v248_v14, 3  ;;  %v309_v23 = vrot.slane %v307_v16, 1  ;;  %p762_p5 = pnand %p761_p4, %p903_p9 }
  0x32   : > { %v251_v24 = vsub.f32 %v250_v18, %v249_v17  ;;  %v265_v26 = vrot.slane %v258_v19, 1  ;;  %v296_v27 = vmax.f32 %v291_v11, %v294_v21  ;;  %v352_v11 = vsub.f32 %v229_v58, %v233_v62  ;;  %p767_p10 = por %p766_p8, %p765_p7 }
  0x33   : > { %v262_v25 = vmul.f32 %v260_v20, %v257_v15  ;;  %v300_v28 = vmin.f32 %v292_v12, %v298_v22  ;;  %v311_v29 = vmul.f32 %v309_v23, %v307_v16  ;;  %v353_v12 = vsub.f32 %v230_v59, %v234_v63  ;;  %p763_p6 = pneg %p762_p5 }
  0x34   : > { %v252_v30 = vmax.f32 %v251_v24, 0.0  ;;  %v267_v32 = vmul.f32 %v265_v26, %v258_v19  ;;  %v236_v17 = vsub.f32 1.0, %v967_v3  ;;  %v356_v19 = vmul.f32 %v980_v48, %v352_v11 }
  0x35   : > { %v263_v31 = vand.u32 2147483647, %v262_v25  ;;  %v301_v33 = vsub.f32 %v300_v28, %v296_v27  ;;  %v312_v36 = vand.u32 2147483647, %v311_v29  ;;  %v357_v20 = vmul.f32 %v980_v48, %v353_v12  ;;  %p768_p13 = pnand %p767_p10, %p763_p6 }
  0x36   : > { %v254_v34 = vrot.slane %v252_v30, 1  ;;  %v268_v35 = vand.u32 2147483647, %v267_v32  ;;  %v346_v23 = vrot.slane %v960_v0, 7  ;;  %v348_v24 = vrot.slane %v960_v0, 4 }
  0x37   : > { %v302_v37 = vmax.f32 %v301_v33, 0.0  ;;  %v393_v27 = vmul.f32 %v236_v17, %v960_v0  ;;  %v394_v28 = vrot.slane %v960_v0, 5  ;;  %v397_v29 = vmul.f32 %v356_v19, %v356_v19 }
  0x38   : > { %v256_v38 = vmul.f32 %v254_v34, %v252_v30  ;;  %v269_v39 = vadd.f32 %v268_v35, %v263_v31  ;;  %v314_v40 = vrot.slane %v268_v35, 3  ;;  %v398_v30 = vmul.f32 %v357_v20, %v357_v20 }
  0x39   : > { %v304_v41 = vrot.slane %v302_v37, 1  ;;  %v342_v31 = vrot.slane %v963_v1, 5  ;;  %v399_v32 = vmul.f32 %v358_v50, %v358_v50  ;;  %v835_v33 = vmov 0  }
  0x3a   : > { %v270_v42 = vsub.f32 %v269_v39, %v256_v38  ;;  %v316_v43 = vadd.f32 %v314_v40, %v312_v36  ;;  %v400_v40 = vadd.f32 %v398_v30, %v397_v29  ;;  %v384_v62 = vand.u32 2147483648, %v967_v3 }
  0x3b   : > { %v306_v44 = vmul.f32 %v304_v41, %v302_v37  ;;  %v396_v37 = vmul.f32 %v394_v28, %v236_v17  ;;  %v402_v41 = vsel %vm401_vm9, %v399_v32, 0.0  ;;  %v836_v12 = vmov 0.0  }
  0x3c   : > { %v271_v45 = vadd.f32 1e-06, %v270_v42  ;;  %228 = vst [vmem:[#allocation2] sm:$0x1] %v836_v12 }
  0x3d   : > { %v317_v47 = vsub.f32 %v316_v43, %v306_v44 }
  0x3e   : > { %676 = vrcp.f32 %v271_v45  ;;  %vm277_vm0 = vweird.f32 %v271_v45  ;;  %v283_v55 = vand.u32 2147483648, %v271_v45  ;;  %v281_v56 = vand.u32 2147483647, %v271_v45 }
  0x3f   : > { %v318_v49 = vadd.f32 1e-06, %v317_v47 }
  0x40   : > { %v284_v7 = vor.u32 1.1754944e-38, %v283_v55  ;;  %vm282_vm5 = vcmp.eq.f32.partialorder %v281_v56, 8.507059e+37 }
  0x41   : > { %678 = vrcp.f32 %v318_v49  ;;  %v330_v61 = vand.u32 2147483648, %v318_v49  ;;  %vm324_vm3 = vweird.f32 %v318_v49  ;;  %v328_v5 = vand.u32 2147483647, %v318_v49 }
  0x42   : > { %680 = vrsqrt.f32 %v967_v3 }
  0x43   : > { %v331_v10 = vor.u32 1.1754944e-38, %v330_v61  ;;  %vm329_vm7 = vcmp.eq.f32.partialorder %v328_v5, 8.507059e+37 }
  0x44   : > { %v677_v51 = vpop.eup %676 }
  0x45   : > { %v273_v52 = vmul.f32 %v677_v51, %v271_v45  ;;  %vm278_vm1 = vweird.f32 %v677_v51 }
  0x46   : > { %vm987_vm2 = vmor %vm277_vm0, %vm278_vm1 }
  0x47   : > { %v679_v53 = vpop.eup %678  ;;  %v274_v54 = vsub.f32 1.0, %v273_v52 }
  0x48   : > { %v320_v57 = vmul.f32 %v679_v53, %v318_v49  ;;  %vm325_vm4 = vweird.f32 %v679_v53  ;;  %v681_v16 = vpop.eup %680 }
  0x49   : > { %v275_v60 = vmul.f32 %v677_v51, %v274_v54  ;;  %vm326_vm6 = vmor %vm324_vm3, %vm325_vm4  ;;  %v375_v26 = vmul.f32 %v681_v16, %v967_v3 }
  0x4a   : > { %v321_v4 = vsub.f32 1.0, %v320_v57 }
  0x4b   : > { %v276_v6 = vadd.f32 %v677_v51, %v275_v60  ;;  %v376_v42 = vmul.f32 %v681_v16, %v375_v26  ;;  %v438_v60 = vmul.f32 %v396_v37, %v396_v37 }
  0x4c   : > { %v322_v8 = vmul.f32 %v679_v53, %v321_v4 }
  0x4d   : > { %v280_v9 = vsel %vm987_vm2, %v677_v51, %v276_v6  ;;  %v377_v49 = vmul.f32 0.5, %v376_v42 }
  0x4e   : > { %v323_v13 = vadd.f32 %v679_v53, %v322_v8  ;;  %v285_v14 = vsel %vm282_vm5, %v284_v7, %v280_v9 }
  0x4f   : > { %v286_v21 = vmul.f32 %v285_v14, %v256_v38  ;;  %v378_v51 = vsub.f32 1.5, %v377_v49 }
  0x50   : > { %v327_v15 = vsel %vm326_vm6, %v679_v53, %v323_v13 }
  0x51   : > { %v332_v18 = vsel %vm329_vm7, %v331_v10, %v327_v15  ;;  %v379_v54 = vmul.f32 %v681_v16, %v378_v51 }
  0x52   : > { %v333_v22 = vmul.f32 %v332_v18, %v306_v44  ;;  %v403_v44 = vadd.f32 %v402_v41, %v400_v40  ;;  %v442_v40 = vld [vmem:[#allocation2] sm:$0x1] }
  0x53   : > { %v380_v58 = vmul.f32 %v379_v54, %v967_v3 }
  0x54   : > { %v335_v25 = vrot.slane %v333_v22, 5  ;;  %v404_v14 = vrot.slane %v403_v44, 4 }
  0x55   : > { %v382_v4 = vsel %vm381_vm11, %v967_v3, %v380_v58 }
  0x56   : > { %vm337_vm8 = vcmp.ge.f32.partialorder %v286_v21, %v335_v25  ;;  %v385_v8 = vsel %vm383_vm12, %v384_v62, %v382_v4  ;;  %v405_v18 = vadd.f32 %v404_v14, %v403_v44 }
  0x57   : > { %v338_v34 = vsel %vm337_vm8, 1, %v835_v33  ;;  %v350_v35 = vsel %vm337_vm8, %v346_v23, %v348_v24  ;;  %v351_v36 = vsel %vm337_vm8, %v286_v21, %v335_v25 }
  0x58   : > { %v339_v38 = vperm.slane %v338_v34, 3  ;;  %v388_v39 = vsub.f32 %v350_v35, %v351_v36  ;;  %v406_v21 = vrot.slane %v405_v18, 2 }
  0x5a   : > { %vm340_vm10 = vcmp.eq.s32.totalorder %v339_v38, 1  ;;  %v390_v43 = vrot.slane %v388_v39, 1  ;;  %v407_v25 = vadd.f32 %v406_v21, %v405_v18 }
  0x5b   : > { %v344_v45 = vsel %vm340_vm10, %v960_v0, %v342_v31  ;;  %v437_v0 = vmul.f32 %v393_v27, %v393_v27 }
  0x5c   : > { %v361_v46 = vmax.f32 %v344_v45, 0.0  ;;  %v392_v1 = vmul.f32 %v390_v43, %v967_v3  ;;  %v359_v47 = vsub.f32 %v344_v45, %v967_v3  ;;  %v408_v29 = vrot.slane %v407_v25, 1 }
  0x5d   : > { %v439_v63 = vadd.f32 %v438_v60, %v437_v0 }
  0x5e   : > { %682 = vrsqrt.f32 %v361_v46  ;;  %v360_v50 = vmul.f32 %v359_v47, %v980_v48  ;;  %vm369_vm13 = vcmp.eq.f32.partialorder %v361_v46, inf  ;;  %v372_v6 = vand.u32 2147483648, %v361_v46 }
  0x5f   : > { %vm371_vm14 = vcmp.eq.f32.partialorder %v361_v46, 0.0  ;;  %v409_v33 = vadd.f32 %v408_v29, %v407_v25  ;;  %v435_v35 = vmul.f32 %v392_v1, %v392_v1  ;;  %v440_v37 = vmul.f32 0.5, %v439_v63 }
  0x60   : > { %v410_v55 = vmul.f32 %v360_v50, %v360_v50 }
  0x62   : > { %v412_v59 = vrot.slane %v410_v55, 3 }
  0x64   : > { %v683_v52 = vpop.eup %682  ;;  %v414_v5 = vsel %vm401_vm9, %v412_v59, 0.0 }
  0x65   : > { %v363_v53 = vmul.f32 %v683_v52, %v361_v46  ;;  %v415_v9 = vrot.slane %v414_v5, 4 }
  0x67   : > { %v364_v56 = vmul.f32 %v683_v52, %v363_v53  ;;  %v416_v15 = vadd.f32 %v415_v9, %v414_v5 }
  0x69   : > { %v365_v57 = vmul.f32 0.5, %v364_v56  ;;  %v417_v3 = vrot.slane %v416_v15, 2 }
  0x6b   : > { %v366_v61 = vsub.f32 1.5, %v365_v57  ;;  %v418_v22 = vadd.f32 %v417_v3, %v416_v15 }
  0x6d   : > { %v367_v2 = vmul.f32 %v683_v52, %v366_v61  ;;  %v419_v26 = vrot.slane %v418_v22, 1 }
  0x6f   : > { %v368_v7 = vmul.f32 %v367_v2, %v361_v46  ;;  %v420_v30 = vadd.f32 %v419_v26, %v418_v22 }
  0x71   : > { %v370_v10 = vsel %vm369_vm13, %v361_v46, %v368_v7 }
  0x72   : > { %v373_v11 = vsel %vm371_vm14, %v372_v6, %v370_v10 }
  0x73   : > { %v386_v13 = vsub.f32 %v373_v11, %v385_v8 }
  0x75   : > { %v387_v16 = vmul.f32 %v386_v13, %v980_v48 }
  0x77   : > { %v421_v17 = vmul.f32 %v387_v16, %v387_v16 }
  0x79   : > { %v423_v19 = vrot.slane %v421_v17, 5 }
  0x7b   : > { %v425_v20 = vsel %vm401_vm9, %v423_v19, 0.0 }
  0x7c   : > { %v426_v23 = vrot.slane %v425_v20, 4 }
  0x7e   : > { %v427_v24 = vadd.f32 %v426_v23, %v425_v20 }
  0x80   : > { %v428_v27 = vrot.slane %v427_v24, 2 }
  0x82   : > { %v429_v28 = vadd.f32 %v428_v27, %v427_v24 }
  0x84   : > { %v430_v31 = vrot.slane %v429_v28, 1 }
  0x86   : > { %v431_v32 = vadd.f32 %v430_v31, %v429_v28 }
  0x88   : > { %v432_v48 = vadd.f32 %v431_v32, %v420_v30 }
  0x8a   : > { %v433_v34 = vmul.f32 5.0, %v432_v48 }
  0x8c   : > { %v434_v36 = vadd.f32 %v433_v34, %v409_v33 }
  0x8e   : > { %v436_v38 = vadd.f32 %v435_v35, %v434_v36 }
  0x90   : > { %v441_v39 = vadd.f32 %v440_v37, %v436_v38 }
  0x92   : > { %444 = vst [vmem:[#allocation1] sm:$0xff] %v441_v39 }
  0x99   : > { %v446_v41 = vld [vmem:[#allocation1 + $0x2] ss:$9 sm:$0xff] }
  0x9a   : > { %v448_v42 = vadd.f32 %v446_v41, %v442_v40 }
  0x9c   : > { %449 = vst [vmem:[#allocation2] sm:$0x1] %v448_v42 }
  0xa3   : > { %v453_v43 = vld [vmem:[#allocation2] sm:$0x1] }
  0xa4   : > { %v455_v44 = vsel %vm454_vm15, %v453_v43, 0.0 }
  0xa5   : > { %456 = vadd.xlane.f32.xlu0 %v455_v44 }
 0x118   : > { %v457_v45 = vpop.xlane.xlu0 %456 }
 0x119   : > { %v458_v46 = vrot.slane %v457_v45, 4 }
 0x11b   : > { %v459_v47 = vadd.f32 %v458_v46, %v457_v45 }
 0x11d   : > { %v460_v49 = vrot.slane %v459_v47, 2 }
 0x11f   : > { %v461_v1 = vadd.f32 %v460_v49, %v459_v47 }
 0x121   : > { %v462_v50 = vrot.slane %v461_v1, 1 }
 0x123   : > { %v463_v51 = vadd.f32 %v462_v50, %v461_v1 }
 0x125   : > { %602 = vpush %v463_v51 }
 0x156   : > { %s603_s19 = spop %602 }
 0x157   : > { %v465_v52 = vstv %s603_s19 }
 0x158   : > { %466 = vst [vmem:[%s221_s16] sm:$0xff] %v465_v52 }
 0x159   : > { %771 = shalt.err (!%p768_p13)
}
 0x15a   : > { %608 = dma.vmem_to_hbm [thread:$0]  (%p903_p9), %s481_s18, 128, %s483_s20, %s468_s28  }
 0x15b PF: > { %s494_s0 = sand.u32 1, %s810_s9   ;;  %p618_p0 = pnand %p589_p12, %p910_p11 }
 0x15c   : > { %s495_s25 = scalar_lea.sflag [#allocation5], %s494_s0 }
 0x15d   : > { %p619_p1 = pneg %p618_p0 }
 0x15f   : > { %805 = dma.done.wait (%p619_p1), %s495_s25, 128  }
 0x160   : > { %807 = vsyncadd (%p619_p1), %s495_s25, 4294967168  ;;  %s21_s14 = sadd.s32 1, %s830_s14   ;;  %s1067_s9 = smov %s814_s10 }
 0x161   : > { %p18_p2 = scmp.ge.s32.totalorder %s21_s14, 4   ;;  %s1068_s10 = smov %s818_s11 }
 0x162   : > { %s1069_s11 = smov %s908_s23  ;;  %s1070_s12 = smov %s826_s13 }
 0x163   : > { %s1071_s13 = smov %s1073_s17  ;;  %20 = sbr.rel (!%p18_p2) target bundleno = 10 (0xa), region = 95 }
 0x168   :  { %501 = vsyncpa [#allocation4], 1 }
 0x169   :  { %503 = vsyncpa [#allocation4 + $0x1], 1 }
 0x16a   :  { %504 = vsyncpa [#allocation7], 1 }
 0x16b   :  { %506 = vsyncpa [#allocation7 + $0x1], 1 }
 0x16c   :  { %507 = vsyncpa [#allocation5], 1 }
 0x16d   :  { %509 = vsyncpa [#allocation5 + $0x1], 1 }

</bundles_post_ra>
